<compile_context>
chip_gen: v7x
topology: tpu7x:2x2x1
jax: 0.10.0
libtpu: 0.0.40
codegen_flags: <defaults>
</compile_context>

<pallas_src>
import functools

import jax
import jax.numpy as jnp
from jax import lax
from jax.experimental import pallas as pl
from jax.experimental.pallas import tpu as pltpu


# ---------------------------------------------------------------------------
# Kernels
# ---------------------------------------------------------------------------

def _ffn_resident_kernel(x_ref, w1_ref, b1_ref, w2_ref, b2_ref, o_ref):
    """Weights fully VMEM-resident; single grid axis over token tiles."""
    h = jnp.dot(x_ref[...], w1_ref[...], preferred_element_type=jnp.float32)
    h = jnp.maximum(h + b1_ref[...].astype(jnp.float32), 0.0)
    y = jnp.dot(h.astype(w2_ref.dtype), w2_ref[...],
                preferred_element_type=jnp.float32)
    o_ref[...] = (y + b2_ref[...].astype(jnp.float32)).astype(o_ref.dtype)


def _ffn_tiled_kernel(x_ref, w1_ref, b1_ref, w2_ref, b2_ref, o_ref, acc_ref,
                      *, filter_size, tf, needs_mask):
    """F walked as an 'arbitrary' reduction grid axis with an f32 accumulator."""
    f = pl.program_id(1)

    @pl.when(f == 0)
    def _():
        acc_ref[...] = jnp.zeros_like(acc_ref)

    # First matmul: native-dtype operands, f32 accumulation on the MXU.
    h = jnp.dot(x_ref[...], w1_ref[...], preferred_element_type=jnp.float32)
    h = jnp.maximum(h + b1_ref[...].astype(jnp.float32), 0.0)

    w2 = w2_ref[...]
    if needs_mask:
        # Last F step may run past F; zero the padded filter columns of h and
        # the padded rows of the W2 block so the (unspecified) out-of-bounds
        # weight data contributes exactly nothing.
        remaining = filter_size - f * tf
        col = lax.broadcasted_iota(jnp.int32, h.shape, 1)
        h = jnp.where(col < remaining, h, 0.0)
        row = lax.broadcasted_iota(jnp.int32, w2.shape, 0)
        w2 = jnp.where(row < remaining, w2, jnp.zeros_like(w2))

    acc_ref[...] += jnp.dot(h.astype(w2.dtype), w2,
                            preferred_element_type=jnp.float32)

    @pl.when(f == pl.num_programs(1) - 1)
    def _():
        o_ref[...] = (acc_ref[...] + b2_ref[...].astype(jnp.float32)
                      ).astype(o_ref.dtype)


# ---------------------------------------------------------------------------
# Tiling selection
# ---------------------------------------------------------------------------

def _round_up(x, m):
    return ((x + m - 1) // m) * m


def _cdiv(a, b):
    return (a + b - 1) // b


def _sublane_pack(itemsize):
    return {4: 8, 2: 16, 1: 32}.get(itemsize, 8)


def _vmem_capacity_bytes():
    try:
        info = pltpu.get_tpu_info()
        cap = int(getattr(info, "vmem_capacity_bytes", 0))
        if cap > 0:
            return cap
    except Exception:
        pass
    return 64 << 20   # conservative (v7x per-TensorCore VMEM)


def _resident_footprint(tm, H, F, itemsize):
    # x + out (double-buffered), W1 + b1 + W2 + b2 (count 2x conservatively),
    # plus the (tm, F) f32 hidden intermediate.
    io = 2 * itemsize * (2 * tm * H + 2 * H * F + F + H)
    return io + 4 * tm * F


def _tiled_footprint(tm, tf, H, itemsize):
    io = 2 * itemsize * (2 * tm * H + 2 * H * tf + tf + H)
    return io + 4 * tm * H + 4 * tm * tf   # f32 acc + f32 hidden chunk


def _choose_tiling(rows, H, F, itemsize, tm_req, max_tf_req, budget):
    pack = _sublane_pack(itemsize)
    rows_padded = _round_up(max(rows, 1), pack)

    tm = 512 if tm_req is None else tm_req
    tm = _round_up(min(tm, rows_padded), pack)
    # Keep >= 2 token tiles whenever possible so the "parallel" axis can be
    # sharded across v7x's two TensorCores.
    if _cdiv(rows, tm) < 2 and rows_padded >= 2 * pack:
        tm = _round_up(_cdiv(rows, 2), pack)

    resident_allowed = (max_tf_req is None) or (max_tf_req >= F)
    if resident_allowed and _resident_footprint(tm, H, F, itemsize) <= budget:
        return tm, F, True, False      # tm, tf, resident, needs_mask

    tf_cap = 2048 if max_tf_req is None else max_tf_req
    if F <= 128:
        tf = F
    else:
        tf = min(_round_up(F, 128), max(128, (tf_cap // 128) * 128))
        while tf > 128 and _tiled_footprint(tm, tf, H, itemsize) > budget:
            tf -= 128
    while tm > pack and _tiled_footprint(tm, tf, H, itemsize) > budget:
        tm = max(pack, _round_up(tm // 2, pack))

    needs_mask = (F % tf) != 0
    return tm, tf, False, needs_mask


# ---------------------------------------------------------------------------
# Wrapper
# ---------------------------------------------------------------------------

@functools.partial(jax.jit, static_argnames=("tm", "max_tf", "cast_to_bf16"))
def feed_forward_network(x, w1, b1, w2, b2, *, tm=None, max_tf=None,
                         cast_to_bf16=False):
    """x: [B, L, H] -> [B, L, H].  Weights stored [in, out]."""
    B, L, H = x.shape
    F = w1.shape[1]
    rows = B * L
    out_dtype = x.dtype

    if cast_to_bf16 and x.dtype == jnp.float32:
        # Accuracy trade-off: bf16 operands, f32 accumulation, f32 output.
        x = x.astype(jnp.bfloat16)
        w1 = w1.astype(jnp.bfloat16)
        b1 = b1.astype(jnp.bfloat16)
        w2 = w2.astype(jnp.bfloat16)
        b2 = b2.astype(jnp.bfloat16)

    itemsize = jnp.dtype(x.dtype).itemsize
    vmem_cap = _vmem_capacity_bytes()
    budget = int(0.65 * vmem_cap)

    tm, tf, resident, needs_mask = _choose_tiling(
        rows, H, F, itemsize, tm, max_tf, budget)

    x2d = x.reshape(rows, H)
    b1_2d = b1.reshape(1, F)
    b2_2d = b2.reshape(1, H)

    n_tok = _cdiv(rows, tm)

    if resident:
        footprint = _resident_footprint(tm, H, F, itemsize)
        bytes_accessed = itemsize * (2 * rows * H + 2 * H * F + F + H)
        grid = (n_tok,)
        in_specs = [
            pl.BlockSpec((tm, H), lambda i: (i, 0)),   # x tile
            pl.BlockSpec((H, F), lambda i: (0, 0)),    # W1, grid-invariant
            pl.BlockSpec((1, F), lambda i: (0, 0)),    # b1
            pl.BlockSpec((F, H), lambda i: (0, 0)),    # W2, grid-invariant
            pl.BlockSpec((1, H), lambda i: (0, 0)),    # b2
        ]
        out_specs = pl.BlockSpec((tm, H), lambda i: (i, 0))
        scratch_shapes = []
        kernel = _ffn_resident_kernel
        dims = ("parallel",)
    else:
        footprint = _tiled_footprint(tm, tf, H, itemsize)
        n_f = _cdiv(F, tf)
        bytes_accessed = itemsize * (2 * rows * H
                                     + n_tok * (2 * H * F + F) + H)
        grid = (n_tok, n_f)
        in_specs = [
            pl.BlockSpec((tm, H), lambda i, f: (i, 0)),   # x tile (F-resident)
            pl.BlockSpec((H, tf), lambda i, f: (0, f)),   # W1 F-chunk
            pl.BlockSpec((1, tf), lambda i, f: (0, f)),   # b1 F-chunk
            pl.BlockSpec((tf, H), lambda i, f: (f, 0)),   # W2 F-chunk
            pl.BlockSpec((1, H), lambda i, f: (0, 0)),    # b2
        ]
        out_specs = pl.BlockSpec((tm, H), lambda i, f: (i, 0))
        scratch_shapes = [pltpu.VMEM((tm, H), jnp.float32)]
        kernel = functools.partial(_ffn_tiled_kernel, filter_size=F, tf=tf,
                                   needs_mask=needs_mask)
        dims = ("parallel", "arbitrary")

    vmem_limit = min(vmem_cap, max(32 << 20, int(1.25 * footprint) + (2 << 20)))

    cost = pl.CostEstimate(
        flops=4 * rows * H * F,
        transcendentals=0,
        bytes_accessed=int(bytes_accessed),
    )

    out = pl.pallas_call(
        kernel,
        out_shape=jax.ShapeDtypeStruct((rows, H), out_dtype),
        grid_spec=pltpu.PrefetchScalarGridSpec(
            num_scalar_prefetch=0,
            grid=grid,
            in_specs=in_specs,
            out_specs=out_specs,
            scratch_shapes=scratch_shapes,
        ),
        compiler_params=pltpu.CompilerParams(
            dimension_semantics=dims,
            vmem_limit_bytes=int(vmem_limit),
        ),
        cost_estimate=cost,
    )(x2d, w1, b1_2d, w2, b2_2d)

    return out.reshape(B, L, H)


# ---------------------------------------------------------------------------
# Init / reference / tests
# ---------------------------------------------------------------------------

def init_params(key, hidden_size, filter_size, dtype=jnp.float32):
    """Deterministic nn.Linear-style init; weights stored [in, out]."""
    k1, k2, k3, k4 = jax.random.split(key, 4)
    bound1 = 1.0 / jnp.sqrt(hidden_size)
    bound2 = 1.0 / jnp.sqrt(filter_size)
    w1 = jax.random.uniform(k1, (hidden_size, filter_size), dtype, -bound1, bound1)
    b1 = jax.random.uniform(k2, (filter_size,), dtype, -bound1, bound1)
    w2 = jax.random.uniform(k3, (filter_size, hidden_size), dtype, -bound2, bound2)
    b2 = jax.random.uniform(k4, (hidden_size,), dtype, -bound2, bound2)
    return w1, b1, w2, b2


def _reference(x, w1, b1, w2, b2):
    return jnp.maximum(x @ w1 + b1, 0.0) @ w2 + b2


if __name__ == "__main__":
    # TODO(synk): relu_dropout (training-mode only) is not applied; the
    # PyTorch forward shown never applies it either, so inference is exact.
    key = jax.random.PRNGKey(0)
    kx, kp, kx2, kp2, kx3, kp3 = jax.random.split(key, 6)

    # --- 1) Main example (module-sized toy shapes) -> resident-weight path --
    hidden_size, filter_size = 32, 64
    batch, length = 2, 8
    x = jax.random.normal(kx, (batch, length, hidden_size), jnp.float32)
    w1, b1, w2, b2 = init_params(kp, hidden_size, filter_size)

    out = feed_forward_network(x, w1, b1, w2, b2)
    out = jax.block_until_ready(out)
    ref = _reference(x, w1, b1, w2, b2)
    assert out.shape == (batch, length, hidden_size)
    assert jnp.allclose(out, ref, atol=1e-2, rtol=1e-2)

    # --- 2) Forced tiled path: multiple F steps, masked partial F tile
    #        (1024 = 2*384 + 256) and a partial token tile. ------------------
    hidden_size2, filter_size2 = 128, 1024
    batch2, length2 = 2, 40          # rows = 80
    x2 = jax.random.normal(kx2, (batch2, length2, hidden_size2), jnp.float32)
    p2 = init_params(kp2, hidden_size2, filter_size2)
    out2 = feed_forward_network(x2, *p2, max_tf=384)
    out2 = jax.block_until_ready(out2)
    ref2 = _reference(x2, *p2)
    assert out2.shape == (batch2, length2, hidden_size2)
    assert jnp.allclose(out2, ref2, atol=1e-2, rtol=1e-2)

    # --- 3) bf16 operands (16-sublane pack, partial token tile, resident) ---
    hidden_size3, filter_size3 = 256, 512
    batch3, length3 = 3, 17          # rows = 51
    x3 = jax.random.normal(kx3, (batch3, length3, hidden_size3),
                           jnp.float32).astype(jnp.bfloat16)
    p3 = [p.astype(jnp.bfloat16)
          for p in init_params(kp3, hidden_size3, filter_size3)]
    out3 = feed_forward_network(x3, *p3)
    out3 = jax.block_until_ready(out3)
    ref3 = _reference(x3.astype(jnp.float32),
                      *[p.astype(jnp.float32) for p in p3])
    assert out3.shape == (batch3, length3, hidden_size3)
    assert jnp.allclose(out3.astype(jnp.float32), ref3, atol=2e-2, rtol=2e-2)

    print("KERNEL_OK")
</pallas_src>

<mosaic_0001>
module attributes {stable_mosaic.version = 11 : i64} {
  func.func @_ffn_resident_kernel(%arg0: i32, %arg1: memref<8x32xf32, #tpu.memory_space<vmem>>, %arg2: memref<32x64xf32, #tpu.memory_space<vmem>>, %arg3: memref<1x64xf32, #tpu.memory_space<vmem>>, %arg4: memref<64x32xf32, #tpu.memory_space<vmem>>, %arg5: memref<1x32xf32, #tpu.memory_space<vmem>>, %arg6: memref<8x32xf32, #tpu.memory_space<vmem>>) attributes {dimension_semantics = [#tpu.dimension_semantics<parallel>], iteration_bounds = array<i64: 2>, scalar_prefetch = 0 : i64, scratch_operands = 0 : i64, tpu.core_type = #tpu.core_type<tc>, window_params = [{transform_indices = @transform_0, window_bounds = array<i64: 8, 32>}, {pipeline_mode = #tpu.pipeline_mode<synchronous>, transform_indices = @transform_1, window_bounds = array<i64: 32, 64>}, {pipeline_mode = #tpu.pipeline_mode<synchronous>, transform_indices = @transform_2, window_bounds = array<i64: 1, 64>}, {pipeline_mode = #tpu.pipeline_mode<synchronous>, transform_indices = @transform_3, window_bounds = array<i64: 64, 32>}, {pipeline_mode = #tpu.pipeline_mode<synchronous>, transform_indices = @transform_4, window_bounds = array<i64: 1, 32>}, {transform_indices = @transform_5, window_bounds = array<i64: 8, 32>}]} {
    %c0 = arith.constant 0 : index
    %c0_0 = arith.constant 0 : index
    %0 = vector.load %arg1[%c0, %c0_0] : memref<8x32xf32, #tpu.memory_space<vmem>>, vector<8x32xf32>
    %c0_1 = arith.constant 0 : index
    %c0_2 = arith.constant 0 : index
    %1 = vector.load %arg2[%c0_1, %c0_2] : memref<32x64xf32, #tpu.memory_space<vmem>>, vector<32x64xf32>
    %cst = arith.constant dense<0.000000e+00> : vector<8x64xf32>
    %2 = tpu.matmul %0, %1, %cst {dimension_numbers = #tpu.dot_dimension_numbers<[1], [0], [0], [1], [0, 0, 1, 1], [], []>} : vector<8x32xf32>, vector<32x64xf32>, vector<8x64xf32> -> vector<8x64xf32>
    %c0_3 = arith.constant 0 : index
    %c0_4 = arith.constant 0 : index
    %3 = vector.load %arg3[%c0_3, %c0_4] : memref<1x64xf32, #tpu.memory_space<vmem>>, vector<1x64xf32>
    %4 = vector.broadcast %3 : vector<1x64xf32> to vector<8x64xf32>
    %5 = arith.addf %2, %4 : vector<8x64xf32>
    %cst_5 = arith.constant 0.000000e+00 : f32
    %6 = vector.broadcast %cst_5 : f32 to vector<8x64xf32>
    %7 = arith.maximumf %5, %6 : vector<8x64xf32>
    %c0_6 = arith.constant 0 : index
    %c0_7 = arith.constant 0 : index
    %8 = vector.load %arg4[%c0_6, %c0_7] : memref<64x32xf32, #tpu.memory_space<vmem>>, vector<64x32xf32>
    %cst_8 = arith.constant dense<0.000000e+00> : vector<8x32xf32>
    %9 = tpu.matmul %7, %8, %cst_8 {dimension_numbers = #tpu.dot_dimension_numbers<[1], [0], [0], [1], [0, 0, 1, 1], [], []>} : vector<8x64xf32>, vector<64x32xf32>, vector<8x32xf32> -> vector<8x32xf32>
    %c0_9 = arith.constant 0 : index
    %c0_10 = arith.constant 0 : index
    %10 = vector.load %arg5[%c0_9, %c0_10] : memref<1x32xf32, #tpu.memory_space<vmem>>, vector<1x32xf32>
    %11 = vector.broadcast %10 : vector<1x32xf32> to vector<8x32xf32>
    %12 = arith.addf %9, %11 : vector<8x32xf32>
    %c0_11 = arith.constant 0 : index
    %c0_12 = arith.constant 0 : index
    %13 = vector.load %arg6[%c0_11, %c0_12] : memref<8x32xf32, #tpu.memory_space<vmem>>, vector<8x32xf32>
    tpu.vector_store %arg6[%c0_11, %c0_12], %12 {strides = array<i32>} : memref<8x32xf32, #tpu.memory_space<vmem>>, vector<8x32xf32>,
    return
  }
  func.func @transform_0(%arg0: i32) -> (i32, i32) {
    %c0_i32 = arith.constant 0 : i32
    %c0_i32_0 = arith.constant 0 : i32
    return %arg0, %c0_i32 : i32, i32
  }
  func.func @transform_1(%arg0: i32) -> (i32, i32) {
    %c0_i32 = arith.constant 0 : i32
    %c0_i32_0 = arith.constant 0 : i32
    %c0_i32_1 = arith.constant 0 : i32
    return %c0_i32, %c0_i32_0 : i32, i32
  }
  func.func @transform_2(%arg0: i32) -> (i32, i32) {
    %c0_i32 = arith.constant 0 : i32
    %c0_i32_0 = arith.constant 0 : i32
    %c0_i32_1 = arith.constant 0 : i32
    return %c0_i32, %c0_i32_0 : i32, i32
  }
  func.func @transform_3(%arg0: i32) -> (i32, i32) {
    %c0_i32 = arith.constant 0 : i32
    %c0_i32_0 = arith.constant 0 : i32
    %c0_i32_1 = arith.constant 0 : i32
    return %c0_i32, %c0_i32_0 : i32, i32
  }
  func.func @transform_4(%arg0: i32) -> (i32, i32) {
    %c0_i32 = arith.constant 0 : i32
    %c0_i32_0 = arith.constant 0 : i32
    %c0_i32_1 = arith.constant 0 : i32
    return %c0_i32, %c0_i32_0 : i32, i32
  }
  func.func @transform_5(%arg0: i32) -> (i32, i32) {
    %c0_i32 = arith.constant 0 : i32
    %c0_i32_0 = arith.constant 0 : i32
    return %arg0, %c0_i32 : i32, i32
  }
}

</mosaic_0001>

<bundles_post_ra>
// kernel: feed_forward_network.1
= control target key start
LH: loop header
LB: loop body
LE: loop exit
PB: predicated region body
PF: predicated region fallthrough
CT: control target
= control target key end

     0   :  { %10 = vsyncpa [#allocation3], 0  ;;  %s830_s0 = inlined_call_operand.vmem [shape: f32[16,32], index: 0, kind: input, shape index: {}]   ;;  %s831_s1 = inlined_call_operand.vmem [shape: f32[32,64], index: 1, kind: input, shape index: {}]   ;;  %s832_s2 = inlined_call_operand.vmem [shape: f32[1,64], index: 2, kind: input, shape index: {}]   ;;  %s833_s3 = inlined_call_operand.vmem [shape: f32[64,32], index: 3, kind: input, shape index: {}]   ;;  %s834_s4 = inlined_call_operand.vmem [shape: f32[1,32], index: 4, kind: input, shape index: {}]   ;;  %s835_s5 = inlined_call_operand.hbm [shape: f32[16,32], index: 5, kind: output, shape index: {}]  }
   0x1   :  { %12 = vsyncpa [#allocation3 + $0x1], 0  ;;  %s686_s18 = smov 0   ;;  %s688_s19 = smov 0  }
   0x2   :  { %s690_s20 = smov 0   ;;  %s692_s21 = smov 0  }
   0x3 LB: > { %s707_s22 = sadd.s32 4294967295, %s650_s21   ;;  %s470_s23 = sadd.s32 4294967294, %s650_s21   ;;  %s650_s21 = sphi %s692_s21, %s841_s21   ;;  %s646_s20 = sphi %s690_s20, %s840_s20   ;;  %s642_s19 = sphi %s688_s19, %s839_s19   ;;  %s638_s18 = sphi %s686_s18, %s838_s18  }
   0x4   : > { %s711_s24 = sadd.s32 1, %s650_s21   ;;  %s135_s25 = sadd.s32 1, %s646_s20 }
   0x5   : > { %s132_s26 = ssub.s32 %s650_s21, %s711_s24  ;;  %p145_p0 = scmp.ne.s32.totalorder %s646_s20, %s642_s19 }
   0x6   : > { %p133_p1 = scmp.eq.s32.totalorder %s132_s26, 0  ;;  %p146_p2 = scmp.eq.s32.totalorder %s707_s22, 1 }
   0x7   : > { %p151_p3 = scmp.ne.s32.totalorder %s642_s19, %s638_s18  ;;  %p152_p4 = scmp.eq.s32.totalorder %s470_s23, 1 }
   0x8   : > { %s722_s27 = scalar_select %p133_p1, %s646_s20, %s135_s25  }
   0x9   : > { %p724_p5 = por %p146_p2, %p145_p0  ;;  %p728_p6 = por %p152_p4, %p151_p3 }
   0xa   : > { %p473_p7 = scmp.ge.s32.totalorder %s650_s21, 1  ;;  %p189_p8 = scmp.lt.s32.totalorder %s650_s21, 3 }
   0xc   : > { %p190_p9 = pnand %p473_p7, %p189_p8 }
   0xd   : > { %v221_v0 = vld [vmem:[%s831_s1] sm:$0xff] (!%p190_p9)  ;;  %v222_v1 = vld [vmem:[%s831_s1 + $0x8] sm:$0xff] (!%p190_p9)  ;;  %v223_v2 = vld [vmem:[%s831_s1 + $0x10] sm:$0xff] (!%p190_p9)  ;;  %v652_v3 = vmov (!%p190_p9), 0.0|0.0   ;;  %vm653_vm0 = vmmov (!%p190_p9), 0   ;;  %v654_v6 = vmov (!%p190_p9), 0.0  }
   0xe   : > { %193 = sbr.rel (%p190_p9) target bundleno = 470 (0x1d6), region = 40  ;;  %528 = vmatprep.subr.bf16.mxu0 (!%p190_p9), %v652_v3  ;;  %v529_v4 = vpack.c.bf16 (!%p190_p9), %v222_v1, %v221_v0  ;;  %v224_v5 = vld [vmem:[%s831_s1 + $0x18] sm:$0xff] (!%p190_p9)  ;;  %506 = vmatprep.mubr.msk.f32.mxu0 (!%p190_p9), %vm653_vm0, %v654_v6  ;;  %p216_p10 = scmp.lt.s32.totalorder (!%p190_p9), %s707_s22, 1  ;;  %v307_v7 = vld [vmem:[%s833_s3] sm:$0xff] (!%p190_p9)  ;;  %v308_v8 = vld [vmem:[%s833_s3 + $0x8] sm:$0xff] (!%p190_p9)  ;;  %vm232_vm1 = vcmask (!%p190_p9), 261120  }
   0xf   : > { %534 = vmatprep.subr.bf16.mxu1 (!%p190_p9), %v652_v3  ;;  %v535_v9 = vpack.c.bf16 (!%p190_p9), %v308_v8, %v307_v7  ;;  %v309_v10 = vld [vmem:[%s833_s3 + $0x10] sm:$0xff] (!%p190_p9)  ;;  %v310_v11 = vld [vmem:[%s833_s3 + $0x18] sm:$0xff] (!%p190_p9)  ;;  %525 = vmatprep.mubr.msk.f32.mxu1 (!%p190_p9), %vm653_vm0, %v654_v6  ;;  %v532_v12 = vpack.c.bf16 (!%p190_p9), %v224_v5, %v223_v2  ;;  %v311_v14 = vld [vmem:[%s833_s3 + $0x20] sm:$0xff] (!%p190_p9)  ;;  %vm322_vm2 = vcmask (!%p190_p9), 523264   ;;  %s213_s26 = sand.u32 (!%p190_p9), 1, %s642_s19   ;;  %s481_s8 = sshll.u32 (!%p190_p9), %s707_s22, 7 }
  0x10   : > { %530 = vmatpush3.bf16.msra.mxu0 (!%p190_p9), %v529_v4  ;;  %v538_v13 = vpack.c.bf16 (!%p190_p9), %v310_v11, %v309_v10  ;;  %v312_v15 = vld [vmem:[%s833_s3 + $0x28] sm:$0xff] (!%p190_p9)  ;;  %v313_v18 = vld [vmem:[%s833_s3 + $0x30] sm:$0xff] (!%p190_p9)  ;;  %v314_v19 = vld [vmem:[%s833_s3 + $0x38] sm:$0xff] (!%p190_p9)  ;;  %s398_s14 = scalar_lea.sflag (!%p190_p9), [#allocation3], %s213_s26 }
  0x11   : > { %531 = vmatprep.subr.bf16.mxu0 (!%p190_p9), %v652_v3  ;;  %536 = vmatpush3.bf16.msra.mxu1 (!%p190_p9), %v535_v9  ;;  %v541_v17 = vpack.c.bf16 (!%p190_p9), %v312_v15, %v311_v14  ;;  %v544_v20 = vpack.c.bf16 (!%p190_p9), %v314_v19, %v313_v18  ;;  %v476_v21 = vld [vmem:[%s832_s2] ss:$0 sm:$0xff] (!%p190_p9) }
  0x12   : > { %537 = vmatprep.subr.bf16.mxu1 (!%p190_p9), %v652_v3  ;;  %v478_v26 = vld [vmem:[%s834_s4] ss:$0 sm:$0xff] (!%p190_p9) }
  0x14   : > { %533 = vmatpush3.bf16.msra.mxu0 (!%p190_p9), %v532_v12 }
  0x15   : > { %s217_s30 = scalar_select %p216_p10, %s707_s22, 1  ;;  %539 = vmatpush3.bf16.msra.mxu1 %v538_v13 }
  0x16   : > { %540 = vmatprep.subr.bf16.mxu1 %v652_v3  ;;  %s655_s22 = smov [#allocation2]  }
  0x17   : > { %s475_s6 = sshll.u32 %s217_s30, 3  ;;  %s474_s30 = sshll.u32 %s213_s26, 3 }
  0x18   : > { %s219_s13 = scalar_lea.vmem %s830_s0, %s475_s6  ;;  %s215_s9 = scalar_lea.vmem [#allocation2], %s474_s30 }
  0x19   : > { %v220_v16 = vld [vmem:[%s219_s13] sm:$0xff]  ;;  %542 = vmatpush3.bf16.msra.mxu1 %v541_v17  ;;  %s411_s10 = sshll.u32 %s215_s9, 4  ;;  %s787_s13 = scalar_lea.hbm %s835_s5, %s481_s8  ;;  %s789_s10 = int_to_ptr.vmem [resolvable:$true] %s411_s10 }
  0x1a   : > { %507 = vmatmul.mubr.msk.f32.vlgmr.msra.gmra.mrb[0].mxu0 %vm232_vm1, %v220_v16  ;;  %543 = vmatprep.subr.bf16.mxu1 %v652_v3  ;;  %s588_s15 = scalar_lea.vmem %s789_s10, 128  ;;  %s592_s16 = sshll.u32 %s655_s22, 4  ;;  %s593_s16 = int_to_ptr.vmem [resolvable:$false] %s592_s16 }
  0x1b   : > { %p589_p11 = scmp.ne.s32.totalorder %s789_s10, %s588_s15  ;;  %s594_s17 = scalar_lea.vmem %s593_s16, 256 }
  0x1c   : > { %p595_p0 = scmp.lt.s32.totalorder %s789_s10, %s593_s16  ;;  %p596_p1 = scmp.lt.s32.totalorder %s594_s17, %s588_s15 }
  0x1d   : > { %545 = vmatpush3.bf16.msra.mxu1 %v544_v20  ;;  %p590_p12 = pnand %p589_p11, %p724_p5 }
  0x1e   : > { %p597_p2 = por %p596_p1, %p595_p0 }
  0x1f   : > { %p591_p13 = pneg %p590_p12 }
  0x21   : > { %p598_p3 = pnand %p597_p2, %p591_p13 }
  0xed   : > { %v302_v22 = vpop.f32.mrb[0].mxu0 }
  0xee   : > { %v303_v23 = vadd.f32 %v476_v21, %v302_v22  ;;  %v508_v24 = vpop.f32.mrb[1].mxu0 }
  0xf0   : > { %v306_v25 = vmax.f32 %v303_v23, 0.0 }
  0xf2   : > { %526 = vmatmul.mubr.msk.f32.vlgmr.msra.gmra.mrb[0].mxu1 %vm322_vm2, %v306_v25 }
 0x1c5   : > { %v392_v27 = vpop.f32.mrb[0].mxu1 }
 0x1c6   : > { %v393_v28 = vadd.f32 %v478_v26, %v392_v27  ;;  %v527_v29 = vpop.f32.mrb[1].mxu1 }
 0x1c8   : > { %396 = vst.msk [vmem:[%s215_s9] sm:$0xff] %vm232_vm1, %v393_v28 }
 0x1c9   : > { %601 = shalt.err (!%p598_p3)
}
 0x1ca   : > { %s602_s23 = scalar_lea.hbm %s787_s13, 128  ;;  %s606_s30 = scalar_lea.hbm %s835_s5, 256 }
 0x1cb   : > { %p603_p4 = scmp.ne.s32.totalorder %s787_s13, %s602_s23  ;;  %p607_p9 = scmp.lt.u32.totalorder %s787_s13, %s835_s5 }
 0x1cc   : > { %p608_p10 = scmp.lt.u32.totalorder %s606_s30, %s602_s23  ;;  %p610_p12 = scmp.lt.u32.totalorder %s602_s23, %s787_s13 }
 0x1cd   : > { %p604_p7 = pnand %p603_p4, %p724_p5 }
 0x1ce   : > { %p609_p11 = por %p608_p10, %p607_p9 }
 0x1cf   : > { %p605_p8 = pneg %p604_p7 }
 0x1d0   : > { %p611_p13 = por %p610_p12, %p609_p11 }
 0x1d2   : > { %p612_p0 = pnand %p611_p13, %p605_p8 }
 0x1d4   : > { %615 = shalt.err (!%p612_p0)
}
 0x1d5   : > { %546 = dma.vmem_to_hbm [thread:$0]  (%p724_p5), %s789_s10, 128, %s787_s13, %s398_s14  }
 0x1d6 PF: > { %p552_p1 = scmp.ge.s32.totalorder %s650_s21, 2  ;;  %s423_s8 = sand.u32 1, %s638_s18  }
 0x1d7   : > { %s424_s9 = scalar_lea.sflag [#allocation3], %s423_s8 }
 0x1d8   : > { %p549_p2 = pnand %p552_p1, %p728_p6 }
 0x1da   : > { %633 = dma.done.wait (!%p549_p2), %s424_s9, 128  }
 0x1db   : > { %635 = vsyncadd (!%p549_p2), %s424_s9, 4294967168  ;;  %p15_p3 = scmp.ge.s32.totalorder %s711_s24, 4   ;;  %s838_s18 = smov %s642_s19 }
 0x1dc   : > { %s839_s19 = smov %s646_s20  ;;  %s840_s20 = smov %s722_s27 }
 0x1dd   : > { %s841_s21 = smov %s711_s24  ;;  %17 = sbr.rel (!%p15_p3) target bundleno = 3 (0x3), region = 75 }
 0x1e4   :  { %429 = vsyncpa [#allocation3], 1 }
 0x1e5   :  { %431 = vsyncpa [#allocation3 + $0x1], 1 }

</bundles_post_ra>
